<compile_context>
chip_gen: v6e
topology: v6e:2x2x1
jax: 0.10.0
libtpu: 0.0.40
codegen_flags: <defaults>
</compile_context>

<pallas_src>
import functools

import jax
import jax.numpy as jnp
from jax.experimental import pallas as pl
from jax.experimental.pallas import tpu as pltpu

_LANE = 128
_MIB = 1 << 20


def _minor_swap_kernel(x_ref, o_ref):
    """Batched transpose of the two minor dims: (Bs, T0, T1) -> (Bs, T1, T0)."""
    o_ref[...] = jnp.swapaxes(x_ref[...], -1, -2)


def _plane_kernel(x_ref, o_ref, *, transpose):
    """2-D (squeezed) kernel view: plain copy or a single minor transpose."""
    x = x_ref[...]
    o_ref[...] = x.T if transpose else x


def _pick_tile(dim, target):
    """Full extent if the dim is small, else the largest 128-multiple <= target."""
    target = max(int(target), _LANE)
    if dim <= target:
        return dim                      # full-extent blocks are always legal
    return max(_LANE, (target // _LANE) * _LANE)


def _padded_block_bytes(dims, dtype):
    """Conservative (sublane/lane padded) VMEM footprint of one buffer."""
    itemsize = jnp.dtype(dtype).itemsize
    packing = max(1, 4 // itemsize)     # values per 32-bit word
    sublane = 8 * packing               # (8,128) f32 / (16,128) bf16 / (32,128) i8
    dims = [int(d) for d in dims]
    if len(dims) == 1:
        dims = [1] + dims
    lead = 1
    for d in dims[:-2]:
        lead *= d
    second = -(-dims[-2] // sublane) * sublane
    minor = -(-dims[-1] // _LANE) * _LANE
    return lead * second * minor * itemsize


def permute_change(x, n1, n2, n3, *, tile0=512, tile1=512,
                   block_budget_bytes=2 * _MIB):
    """Pallas equivalent of torch `x.permute(n1, n2, n3)` for a 3-D tensor."""
    assert x.ndim == 3, "permute_change expects a 3-D tensor"
    perm = (n1, n2, n3)
    assert sorted(perm) == [0, 1, 2], "perm must be a permutation of (0, 1, 2)"

    if perm == (0, 1, 2):               # identity: no data movement, no launch
        return x

    in_shape = x.shape
    out_shape = tuple(in_shape[p] for p in perm)
    dtype = x.dtype
    pos = {a: perm.index(a) for a in range(3)}   # input axis -> output position

    if perm == (0, 2, 1):
        # ---- batched minor-axis swap: blocks (Bs, T0, T1) -> (Bs, T1, T0) ----
        d0, d1, d2 = in_shape
        t0 = _pick_tile(d1, tile0)
        t1 = _pick_tile(d2, tile1)
        plane_bytes = _padded_block_bytes((1, t0, t1), dtype)
        bs = int(max(1, min(d0, block_budget_bytes // max(plane_bytes, 1))))

        in_block = (bs, t0, t1)
        out_block = (bs, t1, t0)
        grid = (pl.cdiv(d0, bs), pl.cdiv(d1, t0), pl.cdiv(d2, t1))

        in_spec = pl.BlockSpec(in_block, lambda i, a, b: (i, a, b))
        out_spec = pl.BlockSpec(out_block, lambda i, a, b: (i, b, a))
        kernel = _minor_swap_kernel
    else:
        # ---- squeezed-plane formulation for the remaining permutations ----
        # Grid axis `s`: never the input minor axis (2) and never the axis
        # that becomes the output minor axis, so both DMAs keep long rows.
        if perm[2] == 2:                # perm == (1, 0, 2)
            s = perm[0]                 # squeezed dim lands at output leading
        else:
            s = 1 - perm[2]
        r0 = 1 - s                      # remaining input axes, ascending: (r0, 2)
        r1 = 2
        transpose = pos[r0] > pos[r1]

        t0 = _pick_tile(in_shape[r0], tile0)
        t1 = _pick_tile(in_shape[r1], tile1)

        in_block = [0, 0, 0]
        in_block[s] = pl.Squeezed()     # kernel sees a 2-D (t0, t1) tile
        in_block[r0] = t0
        in_block[r1] = t1

        out_block = [0, 0, 0]
        out_block[pos[s]] = pl.Squeezed()
        out_block[pos[r0]] = t0
        out_block[pos[r1]] = t1

        grid = (in_shape[s], pl.cdiv(in_shape[r0], t0), pl.cdiv(in_shape[r1], t1))

        ps, pr0, pr1 = pos[s], pos[r0], pos[r1]

        def in_index_map(gs, ga, gb):
            idx = [0, 0, 0]
            idx[s], idx[r0], idx[r1] = gs, ga, gb
            return tuple(idx)

        def out_index_map(gs, ga, gb):
            idx = [0, 0, 0]
            idx[ps], idx[pr0], idx[pr1] = gs, ga, gb
            return tuple(idx)

        in_spec = pl.BlockSpec(tuple(in_block), in_index_map)
        out_spec = pl.BlockSpec(tuple(out_block), out_index_map)
        kernel = functools.partial(_plane_kernel, transpose=transpose)

    def _buf_bytes(block):
        dims = [b for b in block if isinstance(b, int)]
        return _padded_block_bytes(dims, dtype)

    # 2 pipeline buffers each for input and output blocks, plus headroom.
    pipeline_bytes = 2 * (_buf_bytes(in_block) + _buf_bytes(out_block))
    vmem_limit = int(min(max(2 * pipeline_bytes + 4 * _MIB, 16 * _MIB), 48 * _MIB))

    return pl.pallas_call(
        kernel,
        out_shape=jax.ShapeDtypeStruct(out_shape, dtype),
        grid_spec=pltpu.PrefetchScalarGridSpec(
            num_scalar_prefetch=0,
            grid=grid,
            in_specs=[in_spec],
            out_specs=out_spec,
        ),
        compiler_params=pltpu.CompilerParams(
            dimension_semantics=("parallel", "parallel", "parallel"),
            vmem_limit_bytes=vmem_limit,
        ),
    )(x)


if __name__ == "__main__":
    key = jax.random.PRNGKey(0)
    x = jax.random.normal(key, (4, 16, 256), dtype=jnp.float32)

    # All six permutations of a 3-D tensor (identity short-circuits).
    for p in [(0, 1, 2), (0, 2, 1), (1, 0, 2), (1, 2, 0), (2, 0, 1), (2, 1, 0)]:
        out = jax.block_until_ready(permute_change(x, *p))
        ref = jnp.transpose(x, p)
        assert out.shape == ref.shape, (p, out.shape, ref.shape)
        assert jnp.array_equal(out, ref), f"mismatch vs reference for perm {p}"

    # Exercise the batched / multi-tile (0,2,1) path with blocks smaller than
    # the array (multi-tile grid with a partial edge block along axis 1).
    x2 = jax.random.normal(jax.random.PRNGKey(1), (4, 200, 384), dtype=jnp.float32)
    out2 = jax.block_until_ready(
        permute_change(x2, 0, 2, 1, tile0=128, tile1=128))
    assert jnp.array_equal(out2, jnp.transpose(x2, (0, 2, 1)))

    print("KERNEL_OK")
</pallas_src>

<mosaic_0001>
module attributes {stable_mosaic.version = 11 : i64} {
  func.func @_minor_swap_kernel(%arg0: i32, %arg1: i32, %arg2: i32, %arg3: memref<4x16x256xf32, #tpu.memory_space<vmem>>, %arg4: memref<4x256x16xf32, #tpu.memory_space<vmem>>) attributes {dimension_semantics = [#tpu.dimension_semantics<parallel>, #tpu.dimension_semantics<parallel>, #tpu.dimension_semantics<parallel>], iteration_bounds = array<i64: 1, 1, 1>, scalar_prefetch = 0 : i64, scratch_operands = 0 : i64, tpu.core_type = #tpu.core_type<tc>, window_params = [{transform_indices = @transform_0, window_bounds = array<i64: 4, 16, 256>}, {transform_indices = @transform_1, window_bounds = array<i64: 4, 256, 16>}]} {
    %c0 = arith.constant 0 : index
    %c0_0 = arith.constant 0 : index
    %c0_1 = arith.constant 0 : index
    %0 = vector.load %arg3[%c0, %c0_0, %c0_1] : memref<4x16x256xf32, #tpu.memory_space<vmem>>, vector<4x16x256xf32>
    %1 = tpu.transpose %0, [0, 2, 1] : vector<4x16x256xf32> -> vector<4x256x16xf32>
    %c0_2 = arith.constant 0 : index
    %c0_3 = arith.constant 0 : index
    %c0_4 = arith.constant 0 : index
    %2 = vector.load %arg4[%c0_2, %c0_3, %c0_4] : memref<4x256x16xf32, #tpu.memory_space<vmem>>, vector<4x256x16xf32>
    tpu.vector_store %arg4[%c0_2, %c0_3, %c0_4], %1 {strides = array<i32>} : memref<4x256x16xf32, #tpu.memory_space<vmem>>, vector<4x256x16xf32>,
    return
  }
  func.func @transform_0(%arg0: i32, %arg1: i32, %arg2: i32) -> (i32, i32, i32) {
    %c0_i32 = arith.constant 0 : i32
    return %arg0, %arg1, %arg2 : i32, i32, i32
  }
  func.func @transform_1(%arg0: i32, %arg1: i32, %arg2: i32) -> (i32, i32, i32) {
    %c0_i32 = arith.constant 0 : i32
    return %arg0, %arg2, %arg1 : i32, i32, i32
  }
}

</mosaic_0001>

<bundles_post_ra>
// kernel: tpu_custom_call.1
= control target key start
LH: loop header
LB: loop body
LE: loop exit
PB: predicated region body
PF: predicated region fallthrough
CT: control target
= control target key end

     0   :  { %6 = vsyncpa [#allocation3], 0  ;;  %s454_s6 = smov [#allocation2]   ;;  %s982_s0 = inlined_call_operand.hbm [shape: f32[4,16,256], index: 0, kind: input, shape index: {}]   ;;  %s983_s1 = inlined_call_operand.vmem [shape: f32[4,256,16], index: 1, kind: output, shape index: {}]  }
   0x1   :  { %s12_s7 = sshll.u32 %s454_s6, 4  ;;  %s13_s7 = int_to_ptr.vmem [resolvable:$true] %s12_s7 }
   0x2   :  { %s440_s8 = scalar_lea.vmem %s13_s7, 2048  ;;  %p445_p1 = scmp.lt.s32.totalorder %s13_s7, %s13_s7 }
   0x3   :  { %p441_p0 = scmp.ne.s32.totalorder %s13_s7, %s440_s8  ;;  %p446_p2 = scmp.lt.s32.totalorder %s440_s8, %s440_s8 }
   0x5   :  { %p447_p3 = por %p446_p2, %p445_p1 }
   0x7   :  { %p448_p4 = pnand %p447_p3, %p441_p0 }
   0x9   :  { %451 = shalt.err (!%p448_p4)
}
   0xa   :  { %s455_s9 = smov 256   ;;  %s456_s10 = smov 16  }
   0xb   :  { %18 = dma.hbm_to_vmem [thread:$0]  %s982_s0, 2048, %s13_s7, [#allocation3], %s455_s9, %s455_s9, %s456_s10  }
   0xc   :  { %452 = dma.done.wait [#allocation3], 2048  }
   0xd   :  { %453 = vsyncadd [#allocation3], 4294965248  ;;  %v23_v0 = vld [vmem:[#allocation2 + $0x8] sm:$0xff]  ;;  %v22_v1 = vld [vmem:[#allocation2] sm:$0xff]  ;;  %vm294_vm0 = vcmask 130048  }
   0xe   :  { %70 = vxpose.xlu1.b32.start [1/2] (short) %v23_v0, 128  ;;  %38 = vxpose.xlu0.b32.start [1/2] (short) %v22_v1, 128  ;;  %v25_v2 = vld [vmem:[#allocation2 + $0x18] sm:$0xff]  ;;  %v24_v3 = vld [vmem:[#allocation2 + $0x10] sm:$0xff]  ;;  %v27_v4 = vld [vmem:[#allocation2 + $0x28] sm:$0xff] }
   0xf   :  { %v26_v5 = vld [vmem:[#allocation2 + $0x20] sm:$0xff]  ;;  %v29_v6 = vld [vmem:[#allocation2 + $0x38] sm:$0xff]  ;;  %v28_v7 = vld [vmem:[#allocation2 + $0x30] sm:$0xff] }
  0x10   :  { %v31_v8 = vld [vmem:[#allocation2 + $0x48] sm:$0xff]  ;;  %v30_v9 = vld [vmem:[#allocation2 + $0x40] sm:$0xff]  ;;  %v33_v10 = vld [vmem:[#allocation2 + $0x58] sm:$0xff] }
  0x11   :  { %v32_v11 = vld [vmem:[#allocation2 + $0x50] sm:$0xff]  ;;  %v35_v42 = vld [vmem:[#allocation2 + $0x68] sm:$0xff]  ;;  %v34_v43 = vld [vmem:[#allocation2 + $0x60] sm:$0xff] }
  0x12   :  { %71 = vxpose.xlu1.b32.end [2/2] (short) %v25_v2, 128  ;;  %39 = vxpose.xlu0.b32.end [2/2] (short) %v24_v3, 128  ;;  %v37_v46 = vld [vmem:[#allocation2 + $0x78] sm:$0xff]  ;;  %v36_v47 = vld [vmem:[#allocation2 + $0x70] sm:$0xff] }
  0x4b   :  { %134 = vxpose.xlu1.b32.start [1/2] (short) %v27_v4, 128  ;;  %102 = vxpose.xlu0.b32.start [1/2] (short) %v26_v5, 128 }
  0x4f   :  { %135 = vxpose.xlu1.b32.end [2/2] (short) %v29_v6, 128  ;;  %103 = vxpose.xlu0.b32.end [2/2] (short) %v28_v7, 128 }
  0x88   :  { %198 = vxpose.xlu1.b32.start [1/2] (short) %v31_v8, 128  ;;  %166 = vxpose.xlu0.b32.start [1/2] (short) %v30_v9, 128 }
  0x8a   :  { %v86_v12 = vpop.trf.xlu1  ;;  %v54_v13 = vpop.trf.xlu0 }
  0x8b   :  { %311 = vst.msk [vmem:[%s983_s1 + $0x80] sm:$0xff] %vm294_vm0, %v86_v12  ;;  %295 = vst.msk [vmem:[%s983_s1] sm:$0xff] %vm294_vm0, %v54_v13 }
  0x8c   :  { %199 = vxpose.xlu1.b32.end [2/2] (short) %v33_v10, 128  ;;  %167 = vxpose.xlu0.b32.end [2/2] (short) %v32_v11, 128 }
  0x8e   :  { %v87_v14 = vpop.trf.xlu1  ;;  %v55_v15 = vpop.trf.xlu0 }
  0x8f   :  { %312 = vst.msk [vmem:[%s983_s1 + $0x88] sm:$0xff] %vm294_vm0, %v87_v14  ;;  %296 = vst.msk [vmem:[%s983_s1 + $0x8] sm:$0xff] %vm294_vm0, %v55_v15 }
  0x92   :  { %v88_v16 = vpop.trf.xlu1  ;;  %v56_v17 = vpop.trf.xlu0 }
  0x93   :  { %313 = vst.msk [vmem:[%s983_s1 + $0x90] sm:$0xff] %vm294_vm0, %v88_v16  ;;  %297 = vst.msk [vmem:[%s983_s1 + $0x10] sm:$0xff] %vm294_vm0, %v56_v17 }
  0x96   :  { %v89_v18 = vpop.trf.xlu1  ;;  %v57_v19 = vpop.trf.xlu0 }
  0x97   :  { %314 = vst.msk [vmem:[%s983_s1 + $0x98] sm:$0xff] %vm294_vm0, %v89_v18  ;;  %298 = vst.msk [vmem:[%s983_s1 + $0x18] sm:$0xff] %vm294_vm0, %v57_v19 }
  0x9a   :  { %v90_v20 = vpop.trf.xlu1  ;;  %v58_v21 = vpop.trf.xlu0 }
  0x9b   :  { %315 = vst.msk [vmem:[%s983_s1 + $0xa0] sm:$0xff] %vm294_vm0, %v90_v20  ;;  %299 = vst.msk [vmem:[%s983_s1 + $0x20] sm:$0xff] %vm294_vm0, %v58_v21 }
  0x9e   :  { %v91_v22 = vpop.trf.xlu1  ;;  %v59_v23 = vpop.trf.xlu0 }
  0x9f   :  { %316 = vst.msk [vmem:[%s983_s1 + $0xa8] sm:$0xff] %vm294_vm0, %v91_v22  ;;  %300 = vst.msk [vmem:[%s983_s1 + $0x28] sm:$0xff] %vm294_vm0, %v59_v23 }
  0xa2   :  { %v92_v24 = vpop.trf.xlu1  ;;  %v60_v25 = vpop.trf.xlu0 }
  0xa3   :  { %317 = vst.msk [vmem:[%s983_s1 + $0xb0] sm:$0xff] %vm294_vm0, %v92_v24  ;;  %301 = vst.msk [vmem:[%s983_s1 + $0x30] sm:$0xff] %vm294_vm0, %v60_v25 }
  0xa6   :  { %v93_v26 = vpop.trf.xlu1  ;;  %v61_v27 = vpop.trf.xlu0 }
  0xa7   :  { %318 = vst.msk [vmem:[%s983_s1 + $0xb8] sm:$0xff] %vm294_vm0, %v93_v26  ;;  %302 = vst.msk [vmem:[%s983_s1 + $0x38] sm:$0xff] %vm294_vm0, %v61_v27 }
  0xaa   :  { %v94_v28 = vpop.trf.xlu1  ;;  %v62_v29 = vpop.trf.xlu0 }
  0xab   :  { %319 = vst.msk [vmem:[%s983_s1 + $0xc0] sm:$0xff] %vm294_vm0, %v94_v28  ;;  %303 = vst.msk [vmem:[%s983_s1 + $0x40] sm:$0xff] %vm294_vm0, %v62_v29 }
  0xae   :  { %v95_v30 = vpop.trf.xlu1  ;;  %v63_v31 = vpop.trf.xlu0 }
  0xaf   :  { %320 = vst.msk [vmem:[%s983_s1 + $0xc8] sm:$0xff] %vm294_vm0, %v95_v30  ;;  %304 = vst.msk [vmem:[%s983_s1 + $0x48] sm:$0xff] %vm294_vm0, %v63_v31 }
  0xb2   :  { %v96_v32 = vpop.trf.xlu1  ;;  %v64_v33 = vpop.trf.xlu0 }
  0xb3   :  { %321 = vst.msk [vmem:[%s983_s1 + $0xd0] sm:$0xff] %vm294_vm0, %v96_v32  ;;  %305 = vst.msk [vmem:[%s983_s1 + $0x50] sm:$0xff] %vm294_vm0, %v64_v33 }
  0xb6   :  { %v97_v34 = vpop.trf.xlu1  ;;  %v65_v35 = vpop.trf.xlu0 }
  0xb7   :  { %322 = vst.msk [vmem:[%s983_s1 + $0xd8] sm:$0xff] %vm294_vm0, %v97_v34  ;;  %306 = vst.msk [vmem:[%s983_s1 + $0x58] sm:$0xff] %vm294_vm0, %v65_v35 }
  0xba   :  { %v98_v36 = vpop.trf.xlu1  ;;  %v66_v37 = vpop.trf.xlu0 }
  0xbb   :  { %323 = vst.msk [vmem:[%s983_s1 + $0xe0] sm:$0xff] %vm294_vm0, %v98_v36  ;;  %307 = vst.msk [vmem:[%s983_s1 + $0x60] sm:$0xff] %vm294_vm0, %v66_v37 }
  0xbe   :  { %v99_v38 = vpop.trf.xlu1  ;;  %v67_v39 = vpop.trf.xlu0 }
  0xbf   :  { %324 = vst.msk [vmem:[%s983_s1 + $0xe8] sm:$0xff] %vm294_vm0, %v99_v38  ;;  %308 = vst.msk [vmem:[%s983_s1 + $0x68] sm:$0xff] %vm294_vm0, %v67_v39 }
  0xc2   :  { %v100_v40 = vpop.trf.xlu1  ;;  %v68_v41 = vpop.trf.xlu0 }
  0xc3   :  { %325 = vst.msk [vmem:[%s983_s1 + $0xf0] sm:$0xff] %vm294_vm0, %v100_v40  ;;  %309 = vst.msk [vmem:[%s983_s1 + $0x70] sm:$0xff] %vm294_vm0, %v68_v41 }
  0xc5   :  { %262 = vxpose.xlu1.b32.start [1/2] (short) %v35_v42, 128  ;;  %230 = vxpose.xlu0.b32.start [1/2] (short) %v34_v43, 128 }
  0xc6   :  { %v101_v44 = vpop.trf.xlu1  ;;  %v69_v45 = vpop.trf.xlu0 }
  0xc7   :  { %326 = vst.msk [vmem:[%s983_s1 + $0xf8] sm:$0xff] %vm294_vm0, %v101_v44  ;;  %310 = vst.msk [vmem:[%s983_s1 + $0x78] sm:$0xff] %vm294_vm0, %v69_v45 }
  0xc9   :  { %263 = vxpose.xlu1.b32.end [2/2] (short) %v37_v46, 128  ;;  %231 = vxpose.xlu0.b32.end [2/2] (short) %v36_v47, 128 }
  0xca   :  { %v150_v48 = vpop.trf.xlu1  ;;  %v118_v49 = vpop.trf.xlu0 }
  0xcb   :  { %343 = vst.msk [vmem:[%s983_s1 + $0x180] sm:$0xff] %vm294_vm0, %v150_v48  ;;  %327 = vst.msk [vmem:[%s983_s1 + $0x100] sm:$0xff] %vm294_vm0, %v118_v49 }
  0xce   :  { %v151_v50 = vpop.trf.xlu1  ;;  %v119_v51 = vpop.trf.xlu0 }
  0xcf   :  { %344 = vst.msk [vmem:[%s983_s1 + $0x188] sm:$0xff] %vm294_vm0, %v151_v50  ;;  %328 = vst.msk [vmem:[%s983_s1 + $0x108] sm:$0xff] %vm294_vm0, %v119_v51 }
  0xd2   :  { %v152_v52 = vpop.trf.xlu1  ;;  %v120_v53 = vpop.trf.xlu0 }
  0xd3   :  { %345 = vst.msk [vmem:[%s983_s1 + $0x190] sm:$0xff] %vm294_vm0, %v152_v52  ;;  %329 = vst.msk [vmem:[%s983_s1 + $0x110] sm:$0xff] %vm294_vm0, %v120_v53 }
  0xd6   :  { %v153_v54 = vpop.trf.xlu1  ;;  %v121_v55 = vpop.trf.xlu0 }
  0xd7   :  { %346 = vst.msk [vmem:[%s983_s1 + $0x198] sm:$0xff] %vm294_vm0, %v153_v54  ;;  %330 = vst.msk [vmem:[%s983_s1 + $0x118] sm:$0xff] %vm294_vm0, %v121_v55 }
  0xda   :  { %v154_v56 = vpop.trf.xlu1  ;;  %v122_v57 = vpop.trf.xlu0 }
  0xdb   :  { %347 = vst.msk [vmem:[%s983_s1 + $0x1a0] sm:$0xff] %vm294_vm0, %v154_v56  ;;  %331 = vst.msk [vmem:[%s983_s1 + $0x120] sm:$0xff] %vm294_vm0, %v122_v57 }
  0xde   :  { %v155_v58 = vpop.trf.xlu1  ;;  %v123_v59 = vpop.trf.xlu0 }
  0xdf   :  { %348 = vst.msk [vmem:[%s983_s1 + $0x1a8] sm:$0xff] %vm294_vm0, %v155_v58  ;;  %332 = vst.msk [vmem:[%s983_s1 + $0x128] sm:$0xff] %vm294_vm0, %v123_v59 }
  0xe2   :  { %v156_v60 = vpop.trf.xlu1  ;;  %v124_v61 = vpop.trf.xlu0 }
  0xe3   :  { %349 = vst.msk [vmem:[%s983_s1 + $0x1b0] sm:$0xff] %vm294_vm0, %v156_v60  ;;  %333 = vst.msk [vmem:[%s983_s1 + $0x130] sm:$0xff] %vm294_vm0, %v124_v61 }
  0xe6   :  { %v157_v62 = vpop.trf.xlu1  ;;  %v125_v63 = vpop.trf.xlu0 }
  0xe7   :  { %350 = vst.msk [vmem:[%s983_s1 + $0x1b8] sm:$0xff] %vm294_vm0, %v157_v62  ;;  %334 = vst.msk [vmem:[%s983_s1 + $0x138] sm:$0xff] %vm294_vm0, %v125_v63 }
  0xea   :  { %v158_v0 = vpop.trf.xlu1  ;;  %v126_v1 = vpop.trf.xlu0 }
  0xeb   :  { %351 = vst.msk [vmem:[%s983_s1 + $0x1c0] sm:$0xff] %vm294_vm0, %v158_v0  ;;  %335 = vst.msk [vmem:[%s983_s1 + $0x140] sm:$0xff] %vm294_vm0, %v126_v1 }
  0xee   :  { %v159_v2 = vpop.trf.xlu1  ;;  %v127_v3 = vpop.trf.xlu0 }
  0xef   :  { %352 = vst.msk [vmem:[%s983_s1 + $0x1c8] sm:$0xff] %vm294_vm0, %v159_v2  ;;  %336 = vst.msk [vmem:[%s983_s1 + $0x148] sm:$0xff] %vm294_vm0, %v127_v3 }
  0xf2   :  { %v160_v4 = vpop.trf.xlu1  ;;  %v128_v5 = vpop.trf.xlu0 }
  0xf3   :  { %353 = vst.msk [vmem:[%s983_s1 + $0x1d0] sm:$0xff] %vm294_vm0, %v160_v4  ;;  %337 = vst.msk [vmem:[%s983_s1 + $0x150] sm:$0xff] %vm294_vm0, %v128_v5 }
  0xf6   :  { %v161_v6 = vpop.trf.xlu1  ;;  %v129_v7 = vpop.trf.xlu0 }
  0xf7   :  { %354 = vst.msk [vmem:[%s983_s1 + $0x1d8] sm:$0xff] %vm294_vm0, %v161_v6  ;;  %338 = vst.msk [vmem:[%s983_s1 + $0x158] sm:$0xff] %vm294_vm0, %v129_v7 }
  0xfa   :  { %v162_v8 = vpop.trf.xlu1  ;;  %v130_v9 = vpop.trf.xlu0 }
  0xfb   :  { %355 = vst.msk [vmem:[%s983_s1 + $0x1e0] sm:$0xff] %vm294_vm0, %v162_v8  ;;  %339 = vst.msk [vmem:[%s983_s1 + $0x160] sm:$0xff] %vm294_vm0, %v130_v9 }
  0xfe   :  { %v163_v10 = vpop.trf.xlu1  ;;  %v131_v11 = vpop.trf.xlu0 }
  0xff   :  { %356 = vst.msk [vmem:[%s983_s1 + $0x1e8] sm:$0xff] %vm294_vm0, %v163_v10  ;;  %340 = vst.msk [vmem:[%s983_s1 + $0x168] sm:$0xff] %vm294_vm0, %v131_v11 }
 0x102   :  { %v164_v12 = vpop.trf.xlu1  ;;  %v132_v13 = vpop.trf.xlu0 }
 0x103   :  { %357 = vst.msk [vmem:[%s983_s1 + $0x1f0] sm:$0xff] %vm294_vm0, %v164_v12  ;;  %341 = vst.msk [vmem:[%s983_s1 + $0x170] sm:$0xff] %vm294_vm0, %v132_v13 }
 0x106   :  { %v165_v14 = vpop.trf.xlu1  ;;  %v133_v15 = vpop.trf.xlu0 }
 0x107   :  { %358 = vst.msk [vmem:[%s983_s1 + $0x1f8] sm:$0xff] %vm294_vm0, %v165_v14  ;;  %342 = vst.msk [vmem:[%s983_s1 + $0x178] sm:$0xff] %vm294_vm0, %v133_v15 }
 0x10a   :  { %v214_v16 = vpop.trf.xlu1  ;;  %v182_v17 = vpop.trf.xlu0 }
 0x10b   :  { %375 = vst.msk [vmem:[%s983_s1 + $0x280] sm:$0xff] %vm294_vm0, %v214_v16  ;;  %359 = vst.msk [vmem:[%s983_s1 + $0x200] sm:$0xff] %vm294_vm0, %v182_v17 }
 0x10e   :  { %v215_v18 = vpop.trf.xlu1  ;;  %v183_v19 = vpop.trf.xlu0 }
 0x10f   :  { %376 = vst.msk [vmem:[%s983_s1 + $0x288] sm:$0xff] %vm294_vm0, %v215_v18  ;;  %360 = vst.msk [vmem:[%s983_s1 + $0x208] sm:$0xff] %vm294_vm0, %v183_v19 }
 0x112   :  { %v216_v20 = vpop.trf.xlu1  ;;  %v184_v21 = vpop.trf.xlu0 }
 0x113   :  { %377 = vst.msk [vmem:[%s983_s1 + $0x290] sm:$0xff] %vm294_vm0, %v216_v20  ;;  %361 = vst.msk [vmem:[%s983_s1 + $0x210] sm:$0xff] %vm294_vm0, %v184_v21 }
 0x116   :  { %v217_v22 = vpop.trf.xlu1  ;;  %v185_v23 = vpop.trf.xlu0 }
 0x117   :  { %378 = vst.msk [vmem:[%s983_s1 + $0x298] sm:$0xff] %vm294_vm0, %v217_v22  ;;  %362 = vst.msk [vmem:[%s983_s1 + $0x218] sm:$0xff] %vm294_vm0, %v185_v23 }
 0x11a   :  { %v218_v24 = vpop.trf.xlu1  ;;  %v186_v25 = vpop.trf.xlu0 }
 0x11b   :  { %379 = vst.msk [vmem:[%s983_s1 + $0x2a0] sm:$0xff] %vm294_vm0, %v218_v24  ;;  %363 = vst.msk [vmem:[%s983_s1 + $0x220] sm:$0xff] %vm294_vm0, %v186_v25 }
 0x11e   :  { %v219_v26 = vpop.trf.xlu1  ;;  %v187_v27 = vpop.trf.xlu0 }
 0x11f   :  { %380 = vst.msk [vmem:[%s983_s1 + $0x2a8] sm:$0xff] %vm294_vm0, %v219_v26  ;;  %364 = vst.msk [vmem:[%s983_s1 + $0x228] sm:$0xff] %vm294_vm0, %v187_v27 }
 0x122   :  { %v220_v28 = vpop.trf.xlu1  ;;  %v188_v29 = vpop.trf.xlu0 }
 0x123   :  { %381 = vst.msk [vmem:[%s983_s1 + $0x2b0] sm:$0xff] %vm294_vm0, %v220_v28  ;;  %365 = vst.msk [vmem:[%s983_s1 + $0x230] sm:$0xff] %vm294_vm0, %v188_v29 }
 0x126   :  { %v221_v30 = vpop.trf.xlu1  ;;  %v189_v31 = vpop.trf.xlu0 }
 0x127   :  { %382 = vst.msk [vmem:[%s983_s1 + $0x2b8] sm:$0xff] %vm294_vm0, %v221_v30  ;;  %366 = vst.msk [vmem:[%s983_s1 + $0x238] sm:$0xff] %vm294_vm0, %v189_v31 }
 0x12a   :  { %v222_v32 = vpop.trf.xlu1  ;;  %v190_v33 = vpop.trf.xlu0 }
 0x12b   :  { %383 = vst.msk [vmem:[%s983_s1 + $0x2c0] sm:$0xff] %vm294_vm0, %v222_v32  ;;  %367 = vst.msk [vmem:[%s983_s1 + $0x240] sm:$0xff] %vm294_vm0, %v190_v33 }
 0x12e   :  { %v223_v34 = vpop.trf.xlu1  ;;  %v191_v35 = vpop.trf.xlu0 }
 0x12f   :  { %384 = vst.msk [vmem:[%s983_s1 + $0x2c8] sm:$0xff] %vm294_vm0, %v223_v34  ;;  %368 = vst.msk [vmem:[%s983_s1 + $0x248] sm:$0xff] %vm294_vm0, %v191_v35 }
 0x132   :  { %v224_v36 = vpop.trf.xlu1  ;;  %v192_v37 = vpop.trf.xlu0 }
 0x133   :  { %385 = vst.msk [vmem:[%s983_s1 + $0x2d0] sm:$0xff] %vm294_vm0, %v224_v36  ;;  %369 = vst.msk [vmem:[%s983_s1 + $0x250] sm:$0xff] %vm294_vm0, %v192_v37 }
 0x136   :  { %v225_v38 = vpop.trf.xlu1  ;;  %v193_v39 = vpop.trf.xlu0 }
 0x137   :  { %386 = vst.msk [vmem:[%s983_s1 + $0x2d8] sm:$0xff] %vm294_vm0, %v225_v38  ;;  %370 = vst.msk [vmem:[%s983_s1 + $0x258] sm:$0xff] %vm294_vm0, %v193_v39 }
 0x13a   :  { %v226_v40 = vpop.trf.xlu1  ;;  %v194_v41 = vpop.trf.xlu0 }
 0x13b   :  { %387 = vst.msk [vmem:[%s983_s1 + $0x2e0] sm:$0xff] %vm294_vm0, %v226_v40  ;;  %371 = vst.msk [vmem:[%s983_s1 + $0x260] sm:$0xff] %vm294_vm0, %v194_v41 }
 0x13e   :  { %v227_v42 = vpop.trf.xlu1  ;;  %v195_v43 = vpop.trf.xlu0 }
 0x13f   :  { %388 = vst.msk [vmem:[%s983_s1 + $0x2e8] sm:$0xff] %vm294_vm0, %v227_v42  ;;  %372 = vst.msk [vmem:[%s983_s1 + $0x268] sm:$0xff] %vm294_vm0, %v195_v43 }
 0x142   :  { %v228_v44 = vpop.trf.xlu1  ;;  %v196_v45 = vpop.trf.xlu0 }
 0x143   :  { %389 = vst.msk [vmem:[%s983_s1 + $0x2f0] sm:$0xff] %vm294_vm0, %v228_v44  ;;  %373 = vst.msk [vmem:[%s983_s1 + $0x270] sm:$0xff] %vm294_vm0, %v196_v45 }
 0x146   :  { %v229_v46 = vpop.trf.xlu1  ;;  %v197_v47 = vpop.trf.xlu0 }
 0x147   :  { %390 = vst.msk [vmem:[%s983_s1 + $0x2f8] sm:$0xff] %vm294_vm0, %v229_v46  ;;  %374 = vst.msk [vmem:[%s983_s1 + $0x278] sm:$0xff] %vm294_vm0, %v197_v47 }
 0x14a   :  { %v278_v48 = vpop.trf.xlu1  ;;  %v246_v49 = vpop.trf.xlu0 }
 0x14b   :  { %407 = vst.msk [vmem:[%s983_s1 + $0x380] sm:$0xff] %vm294_vm0, %v278_v48  ;;  %391 = vst.msk [vmem:[%s983_s1 + $0x300] sm:$0xff] %vm294_vm0, %v246_v49 }
 0x14e   :  { %v279_v50 = vpop.trf.xlu1  ;;  %v247_v51 = vpop.trf.xlu0 }
 0x14f   :  { %408 = vst.msk [vmem:[%s983_s1 + $0x388] sm:$0xff] %vm294_vm0, %v279_v50  ;;  %392 = vst.msk [vmem:[%s983_s1 + $0x308] sm:$0xff] %vm294_vm0, %v247_v51 }
 0x152   :  { %v280_v52 = vpop.trf.xlu1  ;;  %v248_v53 = vpop.trf.xlu0 }
 0x153   :  { %409 = vst.msk [vmem:[%s983_s1 + $0x390] sm:$0xff] %vm294_vm0, %v280_v52  ;;  %393 = vst.msk [vmem:[%s983_s1 + $0x310] sm:$0xff] %vm294_vm0, %v248_v53 }
 0x156   :  { %v281_v54 = vpop.trf.xlu1  ;;  %v249_v55 = vpop.trf.xlu0 }
 0x157   :  { %410 = vst.msk [vmem:[%s983_s1 + $0x398] sm:$0xff] %vm294_vm0, %v281_v54  ;;  %394 = vst.msk [vmem:[%s983_s1 + $0x318] sm:$0xff] %vm294_vm0, %v249_v55 }
 0x15a   :  { %v282_v56 = vpop.trf.xlu1  ;;  %v250_v57 = vpop.trf.xlu0 }
 0x15b   :  { %411 = vst.msk [vmem:[%s983_s1 + $0x3a0] sm:$0xff] %vm294_vm0, %v282_v56  ;;  %395 = vst.msk [vmem:[%s983_s1 + $0x320] sm:$0xff] %vm294_vm0, %v250_v57 }
 0x15e   :  { %v283_v58 = vpop.trf.xlu1  ;;  %v251_v59 = vpop.trf.xlu0 }
 0x15f   :  { %412 = vst.msk [vmem:[%s983_s1 + $0x3a8] sm:$0xff] %vm294_vm0, %v283_v58  ;;  %396 = vst.msk [vmem:[%s983_s1 + $0x328] sm:$0xff] %vm294_vm0, %v251_v59 }
 0x162   :  { %v284_v60 = vpop.trf.xlu1  ;;  %v252_v61 = vpop.trf.xlu0 }
 0x163   :  { %413 = vst.msk [vmem:[%s983_s1 + $0x3b0] sm:$0xff] %vm294_vm0, %v284_v60  ;;  %397 = vst.msk [vmem:[%s983_s1 + $0x330] sm:$0xff] %vm294_vm0, %v252_v61 }
 0x166   :  { %v285_v62 = vpop.trf.xlu1  ;;  %v253_v63 = vpop.trf.xlu0 }
 0x167   :  { %414 = vst.msk [vmem:[%s983_s1 + $0x3b8] sm:$0xff] %vm294_vm0, %v285_v62  ;;  %398 = vst.msk [vmem:[%s983_s1 + $0x338] sm:$0xff] %vm294_vm0, %v253_v63 }
 0x16a   :  { %v286_v0 = vpop.trf.xlu1  ;;  %v254_v1 = vpop.trf.xlu0 }
 0x16b   :  { %415 = vst.msk [vmem:[%s983_s1 + $0x3c0] sm:$0xff] %vm294_vm0, %v286_v0  ;;  %399 = vst.msk [vmem:[%s983_s1 + $0x340] sm:$0xff] %vm294_vm0, %v254_v1 }
 0x16e   :  { %v287_v2 = vpop.trf.xlu1  ;;  %v255_v3 = vpop.trf.xlu0 }
 0x16f   :  { %416 = vst.msk [vmem:[%s983_s1 + $0x3c8] sm:$0xff] %vm294_vm0, %v287_v2  ;;  %400 = vst.msk [vmem:[%s983_s1 + $0x348] sm:$0xff] %vm294_vm0, %v255_v3 }
 0x172   :  { %v288_v4 = vpop.trf.xlu1  ;;  %v256_v5 = vpop.trf.xlu0 }
 0x173   :  { %417 = vst.msk [vmem:[%s983_s1 + $0x3d0] sm:$0xff] %vm294_vm0, %v288_v4  ;;  %401 = vst.msk [vmem:[%s983_s1 + $0x350] sm:$0xff] %vm294_vm0, %v256_v5 }
 0x176   :  { %v289_v6 = vpop.trf.xlu1  ;;  %v257_v7 = vpop.trf.xlu0 }
 0x177   :  { %418 = vst.msk [vmem:[%s983_s1 + $0x3d8] sm:$0xff] %vm294_vm0, %v289_v6  ;;  %402 = vst.msk [vmem:[%s983_s1 + $0x358] sm:$0xff] %vm294_vm0, %v257_v7 }
 0x17a   :  { %v290_v8 = vpop.trf.xlu1  ;;  %v258_v9 = vpop.trf.xlu0 }
 0x17b   :  { %419 = vst.msk [vmem:[%s983_s1 + $0x3e0] sm:$0xff] %vm294_vm0, %v290_v8  ;;  %403 = vst.msk [vmem:[%s983_s1 + $0x360] sm:$0xff] %vm294_vm0, %v258_v9 }
 0x17e   :  { %v291_v10 = vpop.trf.xlu1  ;;  %v259_v11 = vpop.trf.xlu0 }
 0x17f   :  { %420 = vst.msk [vmem:[%s983_s1 + $0x3e8] sm:$0xff] %vm294_vm0, %v291_v10  ;;  %404 = vst.msk [vmem:[%s983_s1 + $0x368] sm:$0xff] %vm294_vm0, %v259_v11 }
 0x182   :  { %v292_v12 = vpop.trf.xlu1  ;;  %v260_v13 = vpop.trf.xlu0 }
 0x183   :  { %421 = vst.msk [vmem:[%s983_s1 + $0x3f0] sm:$0xff] %vm294_vm0, %v292_v12  ;;  %405 = vst.msk [vmem:[%s983_s1 + $0x370] sm:$0xff] %vm294_vm0, %v260_v13 }
 0x186   :  { %v293_v14 = vpop.trf.xlu1  ;;  %v261_v15 = vpop.trf.xlu0 }
 0x187   :  { %422 = vst.msk [vmem:[%s983_s1 + $0x3f8] sm:$0xff] %vm294_vm0, %v293_v14  ;;  %406 = vst.msk [vmem:[%s983_s1 + $0x378] sm:$0xff] %vm294_vm0, %v261_v15 }
 0x188   :  { %427 = vsyncpa [#allocation3], 1 }

</bundles_post_ra>
